<compile_context>
chip_gen: v5e
topology: v5e:2x2
jax: 0.10.0
libtpu: 0.0.40
codegen_flags: <defaults>
</compile_context>

<pallas_src>
import functools

import jax
import jax.numpy as jnp
from jax.experimental import pallas as pl
from jax.experimental.pallas import tpu as pltpu


# ~2 MiB of raw input data per block: large enough to amortize the ~0.35 us
# per-grid-step overhead and reach ~85%+ of HBM roofline, small enough that
# 2x(in) + 2x(out) double buffers plus the f32 temporaries fit the default
# scoped VMEM limit on every generation (v5e 16 MiB, v6e 32 MiB, v7x 32 MiB).
_TARGET_BLOCK_BYTES = 2 << 20


def _pick_w_tile(C, H, W, itemsize):
    """Pick the W tile.

    The (8, 128) BlockSpec rule requires the last block dim to be a multiple of
    128 or equal to the full W, so we either take the whole W (typical case) or
    tile W in multiples of 128 lanes when a full-W block would blow the ~2 MiB
    budget.  A padded trailing block is harmless: every W column carries its
    own statistics, so padded lanes never contaminate valid ones and their
    writeback is clipped by Pallas.
    """
    col_bytes = C * H * itemsize
    if W <= 128 or col_bytes * W <= _TARGET_BLOCK_BYTES:
        return W
    k = max(1, _TARGET_BLOCK_BYTES // (col_bytes * 128))
    return int(min(W, 128 * k))
    # NOTE: if C*H alone is so large that a 128-lane block exceeds the budget,
    # a reduction grid axis over C would be needed; not required for typical
    # GroupNorm shapes.


def _group_norm_kernel(x_ref, gamma_ref, beta_ref, o_ref, *, eps, n_red):
    # x_ref block: (1, C, H, W_tile) in the native NCHW layout.  Each W column
    # owns its own statistics, so a padded trailing W block cannot contaminate
    # valid columns (and its writeback is clipped).
    x = x_ref[...].astype(jnp.float32)                    # (1, C, H, Wt)

    # Per-(n, w) statistics: reduce over H (sublane reduce) then C (vreg adds),
    # keeping the W lane axis dense.
    s = jnp.sum(x, axis=2, keepdims=True)                  # (1, C, 1, Wt)
    s = jnp.sum(s, axis=1, keepdims=True)                  # (1, 1, 1, Wt)
    mean = s * jnp.float32(1.0 / n_red)

    diff = x - mean                                        # x dead after this
    ss = jnp.sum(diff * diff, axis=2, keepdims=True)       # (1, C, 1, Wt)
    ss = jnp.sum(ss, axis=1, keepdims=True)                # (1, 1, 1, Wt)
    var = ss * jnp.float32(1.0 / (n_red - 1))              # torch.var: unbiased

    inv_dn = jax.lax.rsqrt(var + jnp.float32(eps))         # EUP rsqrt, (1,1,1,Wt)

    y = diff * inv_dn                                      # per-column normalize
    # Per-channel affine: gamma/beta are (1, C, 1, 1) f32, broadcast directly.
    y = y * gamma_ref[...] + beta_ref[...]
    o_ref[...] = y.astype(o_ref.dtype)


def group_norm(x, gamma, beta, *, eps=1e-5, group=4):
    N, C, H, W = x.shape
    assert C % group == 0, "C must be divisible by group"
    assert gamma.shape == (1, C, 1, 1) and beta.shape == (1, C, 1, 1)
    n_red = C * H
    assert n_red > 1, "GroupNorm reduction size C*H must be > 1 (unbiased var)"

    gamma_f32 = gamma.astype(jnp.float32)
    beta_f32 = beta.astype(jnp.float32)

    itemsize = jnp.dtype(x.dtype).itemsize
    w_tile = _pick_w_tile(C, H, W, itemsize)
    grid = (N, pl.cdiv(W, w_tile))

    kernel = functools.partial(_group_norm_kernel, eps=float(eps), n_red=n_red)

    # Advisory cost estimate: pure bandwidth-bound op (read x once, write y
    # once), one rsqrt per (n, w) column.
    cost = pl.CostEstimate(
        flops=9 * N * C * H * W,
        transcendentals=N * W,
        bytes_accessed=2 * N * C * H * W * itemsize + 2 * C * 4,
    )

    return pl.pallas_call(
        kernel,
        out_shape=jax.ShapeDtypeStruct((N, C, H, W), x.dtype),
        grid=grid,
        in_specs=[
            pl.BlockSpec((1, C, H, w_tile), lambda n, w: (n, 0, 0, w)),
            pl.BlockSpec((1, C, 1, 1), lambda n, w: (0, 0, 0, 0)),
            pl.BlockSpec((1, C, 1, 1), lambda n, w: (0, 0, 0, 0)),
        ],
        out_specs=pl.BlockSpec((1, C, H, w_tile), lambda n, w: (n, 0, 0, w)),
        compiler_params=pltpu.CompilerParams(
            dimension_semantics=("parallel", "parallel")),
        cost_estimate=cost,
    )(x, gamma_f32, beta_f32)


def _reference_group_norm(x, gamma, beta, eps=1e-5, group=4):
    """Pure-JAX replica of the PyTorch forward (for verification)."""
    N, C, H, W = x.shape
    xv = x.reshape(N, group, C // group, H, W).astype(jnp.float32)
    dims = (1, 2, 3)
    mean = jnp.mean(xv, axis=dims, keepdims=True)
    var = jnp.var(xv, axis=dims, keepdims=True, ddof=1)  # torch.var default: unbiased
    y = (xv - mean) / jnp.sqrt(var + eps)
    y = y.reshape(N, C, H, W)
    return (y * gamma + beta).astype(x.dtype)


if __name__ == "__main__":
    key = jax.random.PRNGKey(0)
    N, C, H, W = 2, 4, 16, 16
    group = 4
    x = jax.random.normal(key, (N, C, H, W), dtype=jnp.float32)

    # Module's _param_init: gamma = ones, beta = zeros.
    gamma = jnp.ones((1, C, 1, 1), dtype=jnp.float32)
    beta = jnp.zeros((1, C, 1, 1), dtype=jnp.float32)

    out = jax.block_until_ready(group_norm(x, gamma, beta, eps=1e-5, group=group))
    ref = _reference_group_norm(x, gamma, beta, eps=1e-5, group=group)
    assert out.shape == (N, C, H, W)
    assert jnp.allclose(out, ref, atol=1e-4, rtol=1e-4), "mismatch vs reference"

    # Extra check with non-trivial affine params to validate the per-channel
    # gamma/beta broadcast in the native layout.
    kg, kb = jax.random.split(jax.random.PRNGKey(1))
    gamma2 = jax.random.normal(kg, (1, C, 1, 1), dtype=jnp.float32)
    beta2 = jax.random.normal(kb, (1, C, 1, 1), dtype=jnp.float32)
    out2 = jax.block_until_ready(group_norm(x, gamma2, beta2, eps=1e-5, group=group))
    ref2 = _reference_group_norm(x, gamma2, beta2, eps=1e-5, group=group)
    assert jnp.allclose(out2, ref2, atol=1e-4, rtol=1e-4), "mismatch vs reference (affine)"

    print("KERNEL_OK")
</pallas_src>

<mosaic_0001>
module attributes {stable_mosaic.version = 11 : i64} {
  func.func @_group_norm_kernel(%arg0: i32, %arg1: i32, %arg2: memref<1x4x16x16xf32, #tpu.memory_space<vmem>>, %arg3: memref<1x4x1x1xf32, #tpu.memory_space<vmem>>, %arg4: memref<1x4x1x1xf32, #tpu.memory_space<vmem>>, %arg5: memref<1x4x16x16xf32, #tpu.memory_space<vmem>>) attributes {dimension_semantics = [#tpu.dimension_semantics<parallel>, #tpu.dimension_semantics<parallel>], iteration_bounds = array<i64: 2, 1>, scalar_prefetch = 0 : i64, scratch_operands = 0 : i64, tpu.core_type = #tpu.core_type<tc>, window_params = [{transform_indices = @transform_0, window_bounds = array<i64: 1, 4, 16, 16>}, {pipeline_mode = #tpu.pipeline_mode<synchronous>, transform_indices = @transform_1, window_bounds = array<i64: 1, 4, 1, 1>}, {pipeline_mode = #tpu.pipeline_mode<synchronous>, transform_indices = @transform_2, window_bounds = array<i64: 1, 4, 1, 1>}, {transform_indices = @transform_3, window_bounds = array<i64: 1, 4, 16, 16>}]} {
    %c0 = arith.constant 0 : index
    %c0_0 = arith.constant 0 : index
    %c0_1 = arith.constant 0 : index
    %c0_2 = arith.constant 0 : index
    %0 = vector.load %arg2[%c0, %c0_0, %c0_1, %c0_2] : memref<1x4x16x16xf32, #tpu.memory_space<vmem>>, vector<1x4x16x16xf32>
    %cst = arith.constant dense<0.000000e+00> : vector<1x4x16xf32>
    %1 = vector.multi_reduction <add>, %0, %cst [2] : vector<1x4x16x16xf32> to vector<1x4x16xf32>
    %2 = vector.shape_cast %1 : vector<1x4x16xf32> to vector<1x4x1x16xf32>
    %cst_3 = arith.constant dense<0.000000e+00> : vector<1x1x16xf32>
    %3 = vector.multi_reduction <add>, %2, %cst_3 [1] : vector<1x4x1x16xf32> to vector<1x1x16xf32>
    %4 = vector.shape_cast %3 : vector<1x1x16xf32> to vector<1x1x1x16xf32>
    %cst_4 = arith.constant 1.562500e-02 : f32
    %5 = vector.broadcast %cst_4 : f32 to vector<1x1x1x16xf32>
    %6 = arith.mulf %4, %5 : vector<1x1x1x16xf32>
    %7 = vector.broadcast %6 : vector<1x1x1x16xf32> to vector<1x4x16x16xf32>
    %8 = arith.subf %0, %7 : vector<1x4x16x16xf32>
    %9 = arith.mulf %8, %8 : vector<1x4x16x16xf32>
    %cst_5 = arith.constant dense<0.000000e+00> : vector<1x4x16xf32>
    %10 = vector.multi_reduction <add>, %9, %cst_5 [2] : vector<1x4x16x16xf32> to vector<1x4x16xf32>
    %11 = vector.shape_cast %10 : vector<1x4x16xf32> to vector<1x4x1x16xf32>
    %cst_6 = arith.constant dense<0.000000e+00> : vector<1x1x16xf32>
    %12 = vector.multi_reduction <add>, %11, %cst_6 [1] : vector<1x4x1x16xf32> to vector<1x1x16xf32>
    %13 = vector.shape_cast %12 : vector<1x1x16xf32> to vector<1x1x1x16xf32>
    %cst_7 = arith.constant 0.0158730168 : f32
    %14 = vector.broadcast %cst_7 : f32 to vector<1x1x1x16xf32>
    %15 = arith.mulf %13, %14 : vector<1x1x1x16xf32>
    %cst_8 = arith.constant 9.99999974E-6 : f32
    %16 = vector.broadcast %cst_8 : f32 to vector<1x1x1x16xf32>
    %17 = arith.addf %15, %16 : vector<1x1x1x16xf32>
    %18 = math.rsqrt %17 : vector<1x1x1x16xf32>
    %19 = vector.broadcast %18 : vector<1x1x1x16xf32> to vector<1x4x16x16xf32>
    %20 = arith.mulf %8, %19 : vector<1x4x16x16xf32>
    %c0_9 = arith.constant 0 : index
    %c0_10 = arith.constant 0 : index
    %c0_11 = arith.constant 0 : index
    %c0_12 = arith.constant 0 : index
    %21 = vector.load %arg3[%c0_9, %c0_10, %c0_11, %c0_12] : memref<1x4x1x1xf32, #tpu.memory_space<vmem>>, vector<1x4x1x1xf32>
    %22 = vector.broadcast %21 : vector<1x4x1x1xf32> to vector<1x4x16x16xf32>
    %23 = arith.mulf %20, %22 : vector<1x4x16x16xf32>
    %c0_13 = arith.constant 0 : index
    %c0_14 = arith.constant 0 : index
    %c0_15 = arith.constant 0 : index
    %c0_16 = arith.constant 0 : index
    %24 = vector.load %arg4[%c0_13, %c0_14, %c0_15, %c0_16] : memref<1x4x1x1xf32, #tpu.memory_space<vmem>>, vector<1x4x1x1xf32>
    %25 = vector.broadcast %24 : vector<1x4x1x1xf32> to vector<1x4x16x16xf32>
    %26 = arith.addf %23, %25 : vector<1x4x16x16xf32>
    %c0_17 = arith.constant 0 : index
    %c0_18 = arith.constant 0 : index
    %c0_19 = arith.constant 0 : index
    %c0_20 = arith.constant 0 : index
    %27 = vector.load %arg5[%c0_17, %c0_18, %c0_19, %c0_20] : memref<1x4x16x16xf32, #tpu.memory_space<vmem>>, vector<1x4x16x16xf32>
    tpu.vector_store %arg5[%c0_17, %c0_18, %c0_19, %c0_20], %26 {strides = array<i32>} : memref<1x4x16x16xf32, #tpu.memory_space<vmem>>, vector<1x4x16x16xf32>,
    return
  }
  func.func @transform_0(%arg0: i32, %arg1: i32) -> (i32, i32, i32, i32) {
    %c0_i32 = arith.constant 0 : i32
    %c0_i32_0 = arith.constant 0 : i32
    %c0_i32_1 = arith.constant 0 : i32
    return %arg0, %c0_i32, %c0_i32_0, %arg1 : i32, i32, i32, i32
  }
  func.func @transform_1(%arg0: i32, %arg1: i32) -> (i32, i32, i32, i32) {
    %c0_i32 = arith.constant 0 : i32
    %c0_i32_0 = arith.constant 0 : i32
    %c0_i32_1 = arith.constant 0 : i32
    %c0_i32_2 = arith.constant 0 : i32
    %c0_i32_3 = arith.constant 0 : i32
    return %c0_i32, %c0_i32_0, %c0_i32_1, %c0_i32_2 : i32, i32, i32, i32
  }
  func.func @transform_2(%arg0: i32, %arg1: i32) -> (i32, i32, i32, i32) {
    %c0_i32 = arith.constant 0 : i32
    %c0_i32_0 = arith.constant 0 : i32
    %c0_i32_1 = arith.constant 0 : i32
    %c0_i32_2 = arith.constant 0 : i32
    %c0_i32_3 = arith.constant 0 : i32
    return %c0_i32, %c0_i32_0, %c0_i32_1, %c0_i32_2 : i32, i32, i32, i32
  }
  func.func @transform_3(%arg0: i32, %arg1: i32) -> (i32, i32, i32, i32) {
    %c0_i32 = arith.constant 0 : i32
    %c0_i32_0 = arith.constant 0 : i32
    %c0_i32_1 = arith.constant 0 : i32
    return %arg0, %c0_i32, %c0_i32_0, %arg1 : i32, i32, i32, i32
  }
}

</mosaic_0001>

<bundles_post_ra>
// kernel: tpu_custom_call.1
= control target key start
LH: loop header
LB: loop body
LE: loop exit
PB: predicated region body
PF: predicated region fallthrough
CT: control target
= control target key end

     0   :  { %8 = vsyncpa [#allocation3], 0  ;;  %s999_s0 = inlined_call_operand.hbm [shape: f32[2,4,16,16], index: 0, kind: input, shape index: {}]   ;;  %s1000_s1 = inlined_call_operand.vmem [shape: f32[1,4,1,1], index: 1, kind: input, shape index: {}]   ;;  %s1001_s2 = inlined_call_operand.vmem [shape: f32[1,4,1,1], index: 2, kind: input, shape index: {}]   ;;  %s1002_s3 = inlined_call_operand.hbm [shape: f32[2,4,16,16], index: 3, kind: output, shape index: {}]  }
   0x1   :  { %10 = vsyncpa [#allocation3 + $0x1], 0 }
   0x2   :  { %11 = vsyncpa [#allocation4], 0 }
   0x3   :  { %13 = vsyncpa [#allocation4 + $0x1], 0  ;;  %s758_s12 = smov 0   ;;  %s760_s13 = smov 0  }
   0x4   :  { %s762_s14 = smov 0   ;;  %s764_s15 = smov 0  }
   0x5   :  { %s766_s16 = smov 0   ;;  %s768_s17 = smov 0  }
   0x6 LB: > { %s522_s18 = sadd.s32 4294967295, %s731_s17   ;;  %s523_s19 = sadd.s32 4294967294, %s731_s17   ;;  %s731_s17 = sphi %s768_s17, %s19_s17   ;;  %s727_s16 = sphi %s766_s16, %s1011_s16   ;;  %s723_s15 = sphi %s764_s15, %s1010_s15   ;;  %s719_s14 = sphi %s762_s14, %s1009_s14   ;;  %s715_s13 = sphi %s760_s13, %s1008_s13   ;;  %s711_s12 = sphi %s758_s12, %s1007_s12  }
   0x7   : > { %s31_s20 = sadd.s32 1, %s727_s16  ;;  %s40_s21 = sadd.s32 1, %s719_s14 }
   0x8   : > { %p33_p0 = scmp.ge.s32.totalorder %s31_s20, 2  ;;  %p47_p1 = scmp.ne.s32.totalorder %s719_s14, %s715_s13 }
   0x9   : > { %p48_p2 = scmp.eq.s32.totalorder %s731_s17, 0  ;;  %p53_p3 = scmp.ne.s32.totalorder %s715_s13, %s711_s12 }
   0xa   : > { %s1013_s20 = smov (%p33_p0, %s31_s20), 0  ;;  %p54_p5 = scmp.eq.s32.totalorder %s522_s18, 0 }
   0xb   : > { %p799_p4 = por %p48_p2, %p47_p1  ;;  %s35_s23 = ssub.s32 %s727_s16, %s1013_s20 }
   0xc   : > { %p121_p6 = scmp.eq.s32.totalorder %s522_s18, 1  ;;  %p38_p7 = scmp.eq.s32.totalorder %s35_s23, 0 }
   0xd   : > { %p805_p8 = por %p54_p5, %p53_p3  ;;  %p127_p10 = scmp.eq.s32.totalorder %s523_s19, 1 }
   0xe   : > { %p809_p9 = por %p121_p6, %p47_p1  ;;  %p525_p12 = scmp.ge.s32.totalorder %s731_s17, 2 }
   0xf   : > { %s814_s26 = scalar_select %p38_p7, %s719_s14, %s40_s21  }
  0x10   : > { %p816_p11 = por %p127_p10, %p53_p3  ;;  %p551_p13 = scmp.lt.s32.totalorder %s731_s17, 2 }
  0x11   : > { %s153_s28 = sand.u32 1, %s719_s14   ;;  %s537_s30 = sshll.u32 %s727_s16, 6 }
  0x12   : > { %s526_s29 = sshll.u32 %s153_s28, 6  ;;  %s163_s6 = scalar_lea.hbm %s999_s0, %s537_s30 }
  0x13   : > { %s157_s7 = scalar_lea.vmem [#allocation2], %s526_s29  ;;  %s164_s9 = sshll.u32 %s163_s6, 4  ;;  %s165_s9 = int_to_ptr.hbm [resolvable:$true] %s164_s9 }
  0x14   : > { %s166_s8 = sshll.u32 %s157_s7, 4  ;;  %p544_p0 = pnand %p551_p13, %p799_p4  ;;  %s167_s8 = int_to_ptr.vmem [resolvable:$true] %s166_s8 }
  0x15   : > { %p529_p1 = scmp.ge.s32.totalorder %s731_s17, 1  ;;  %s154_s10 = scalar_lea.sflag [#allocation3], %s153_s28 }
  0x16   : > { %s733_s11 = smov 128   ;;  %s734_s18 = smov 8  }
  0x17   : > { %546 = dma.hbm_to_vmem [thread:$0]  (!%p544_p0), %s165_s9, 1024, %s167_s8, %s154_s10, %s733_s11, %s733_s11, %s734_s18  }
  0x18   : > { %p174_p2 = scmp.lt.s32.totalorder %s731_s17, 3 }
  0x1a   : > { %p175_p3 = pnand %p529_p1, %p174_p2 }
  0x1b   : > { %s832_s19 = sand.u32 (!%p175_p3), 1, %s715_s13  }
  0x1c   : > { %178 = sbr.rel (%p175_p3) target bundleno = 176 (0xb0), region = 32  ;;  %s530_s21 = sshll.u32 (!%p175_p3), %s832_s19, 6 }
  0x1d   : > { %s181_s23 = scalar_lea.sflag (!%p175_p3), [#allocation3], %s832_s19  ;;  %s838_s22 = scalar_lea.vmem (!%p175_p3), [#allocation2], %s530_s21 }
  0x21   : > { %702 = dma.done.wait (%p805_p8), %s181_s23, 1024  }
  0x22   : > { %704 = vsyncadd (%p805_p8), %s181_s23, 4294966272  ;;  %v735_v0 = vmov 0   ;;  %v609_v1 = vld [vmem:[%s1000_s1 + $0x2] ss:$0 sm:$0xff]  ;;  %v610_v2 = vld [vmem:[%s1000_s1] ss:$0 sm:$0xff] }
  0x23   : > { %607 = vset.pattern.permute.xlu1 %v735_v0  ;;  %606 = vset.pattern.permute.xlu0 %v735_v0  ;;  %v615_v3 = vld [vmem:[%s1001_s2] ss:$0 sm:$0xff]  ;;  %v611_v4 = vld [vmem:[%s1000_s1 + $0x3] ss:$0 sm:$0xff]  ;;  %v612_v5 = vld [vmem:[%s1000_s1 + $0x1] ss:$0 sm:$0xff] }
  0x24   : > { %608 = vset.pattern.permute.xlu2 %v735_v0  ;;  %361 = vperm.xlu1 %607, %v609_v1   ;;  %v616_v6 = vld [vmem:[%s1001_s2 + $0x1] ss:$0 sm:$0xff]  ;;  %vm216_vm0 = vcmask 130048   ;;  %v209_v8 = vld [vmem:[%s838_s22 + $0x8] sm:$0xff]  ;;  %v210_v9 = vld [vmem:[%s838_s22 + $0x10] sm:$0xff]  ;;  %s538_s30 = sshll.u32 %s723_s15, 6 }
  0x25   : > { %353 = vperm.xlu0 %606, %v610_v2   ;;  %389 = vperm.xlu2 %608, %v615_v3   ;;  %v208_v7 = vld [vmem:[%s838_s22] sm:$0xff]  ;;  %v211_v10 = vld [vmem:[%s838_s22 + $0x18] sm:$0xff]  ;;  %v218_v12 = vsel %vm216_vm0, %v209_v8, 0.0  ;;  %v226_v13 = vsel %vm216_vm0, %v210_v9, 0.0  ;;  %v213_v15 = vld [vmem:[%s838_s22 + $0x28] sm:$0xff]  ;;  %s433_s24 = scalar_lea.hbm %s1002_s3, %s538_s30  ;;  %s421_s6 = scalar_lea.sflag [#allocation4], %s832_s19 }
  0x26   : > { %v217_v11 = vsel %vm216_vm0, %v208_v7, 0.0  ;;  %v212_v14 = vld [vmem:[%s838_s22 + $0x20] sm:$0xff]  ;;  %v227_v17 = vsel %vm216_vm0, %v211_v10, 0.0  ;;  %v236_v21 = vsel %vm216_vm0, %v213_v15, 0.0  ;;  %v214_v23 = vld [vmem:[%s838_s22 + $0x30] sm:$0xff]  ;;  %v215_v24 = vld [vmem:[%s838_s22 + $0x38] sm:$0xff] }
  0x27   : > { %v219_v16 = vadd.f32 %v218_v12, %v217_v11  ;;  %v613_v18 = vld [vmem:[%s1001_s2 + $0x3] ss:$0 sm:$0xff]  ;;  %v228_v19 = vadd.f32 %v227_v17, %v226_v13  ;;  %v235_v20 = vsel %vm216_vm0, %v212_v14, 0.0  ;;  %v614_v22 = vld [vmem:[%s1001_s2 + $0x2] ss:$0 sm:$0xff]  ;;  %v244_v28 = vsel %vm216_vm0, %v214_v23, 0.0 }
  0x28   : > { %v237_v26 = vadd.f32 %v236_v21, %v235_v20  ;;  %v245_v29 = vsel %vm216_vm0, %v215_v24, 0.0  ;;  %s936_s22 = scalar_lea.vmem [#allocation5], %s530_s21  ;;  %s436_s5 = sshll.u32 %s433_s24, 4  ;;  %s437_s5 = int_to_ptr.hbm [resolvable:$true] %s436_s5 }
  0x29   : > { %v220_v25 = vrot.slane %v219_v16, 4  ;;  %v229_v27 = vrot.slane %v228_v19, 4  ;;  %v246_v32 = vadd.f32 %v245_v29, %v244_v28  ;;  %s434_s15 = sshll.u32 %s936_s22, 4  ;;  %s663_s7 = sshra.s32 %s437_s5, 4  ;;  %s435_s15 = int_to_ptr.vmem [resolvable:$true] %s434_s15  ;;  %s664_s7 = int_to_ptr.hbm [resolvable:$true] %s663_s7 }
  0x2a   : > { %v238_v31 = vrot.slane %v237_v26, 4  ;;  %s665_s8 = scalar_lea.hbm %s664_s7, 64  ;;  %s669_s11 = scalar_lea.hbm %s1002_s3, 128 }
  0x2b   : > { %v221_v30 = vadd.f32 %v220_v25, %v219_v16  ;;  %v230_v33 = vadd.f32 %v229_v27, %v228_v19  ;;  %v247_v36 = vrot.slane %v246_v32, 4  ;;  %p666_p4 = scmp.ne.s32.totalorder %s664_s7, %s665_s8  ;;  %p670_p7 = scmp.lt.s32.totalorder %s664_s7, %s1002_s3 }
  0x2c   : > { %365 = vperm.xlu1 %607, %v611_v4   ;;  %v239_v35 = vadd.f32 %v238_v31, %v237_v26  ;;  %p671_p8 = scmp.lt.s32.totalorder %s669_s11, %s665_s8 }
  0x2d   : > { %357 = vperm.xlu0 %606, %v612_v5   ;;  %393 = vperm.xlu2 %608, %v616_v6   ;;  %v222_v34 = vrot.slane %v221_v30, 2  ;;  %v231_v37 = vrot.slane %v230_v33, 2  ;;  %v248_v40 = vadd.f32 %v247_v36, %v246_v32  ;;  %p667_p5 = pnand %p666_p4, %p809_p9 }
  0x2e   : > { %v240_v39 = vrot.slane %v239_v35, 2  ;;  %p672_p10 = por %p671_p8, %p670_p7 }
  0x2f   : > { %v223_v38 = vadd.f32 %v222_v34, %v221_v30  ;;  %v232_v41 = vadd.f32 %v231_v37, %v230_v33  ;;  %v249_v44 = vrot.slane %v248_v40, 2  ;;  %p668_p6 = pneg %p667_p5 }
  0x30   : > { %v241_v43 = vadd.f32 %v240_v39, %v239_v35 }
  0x31   : > { %v224_v42 = vrot.slane %v223_v38, 1  ;;  %v233_v45 = vrot.slane %v232_v41, 1  ;;  %v250_v48 = vadd.f32 %v249_v44, %v248_v40  ;;  %p673_p13 = pnand %p672_p10, %p668_p6 }
  0x32   : > { %v242_v47 = vrot.slane %v241_v43, 1 }
  0x33   : > { %v225_v46 = vadd.f32 %v224_v42, %v223_v38  ;;  %v234_v49 = vadd.f32 %v233_v45, %v232_v41  ;;  %v251_v51 = vrot.slane %v250_v48, 1 }
  0x34   : > { %401 = vperm.xlu1 %607, %v613_v18   ;;  %v243_v50 = vadd.f32 %v242_v47, %v241_v43 }
  0x35   : > { %397 = vperm.xlu0 %606, %v614_v22   ;;  %v253_v52 = vsel %vm216_vm0, %v225_v46, 0.0  ;;  %v254_v53 = vsel %vm216_vm0, %v234_v49, 0.0  ;;  %v252_v54 = vadd.f32 %v251_v51, %v250_v48 }
  0x36   : > { %v255_v55 = vadd.f32 %v254_v53, %v253_v52  ;;  %v256_v56 = vsel %vm216_vm0, %v243_v50, 0.0 }
  0x37   : > { %v258_v58 = vsel %vm216_vm0, %v252_v54, 0.0 }
  0x38   : > { %v257_v57 = vadd.f32 %v256_v56, %v255_v55 }
  0x3a   : > { %v259_v59 = vadd.f32 %v258_v58, %v257_v57 }
  0x3c   : > { %v260_v60 = vmul.f32 0.015625, %v259_v59 }
  0x3e   : > { %v888_v61 = vsub.f32 %v208_v7, %v260_v60  ;;  %v890_v62 = vsub.f32 %v209_v8, %v260_v60  ;;  %v892_v63 = vsub.f32 %v210_v9, %v260_v60  ;;  %v894_v0 = vsub.f32 %v211_v10, %v260_v60 }
  0x3f   : > { %v896_v1 = vsub.f32 %v212_v14, %v260_v60  ;;  %v898_v2 = vsub.f32 %v213_v15, %v260_v60  ;;  %v908_v7 = vsub.f32 %v214_v23, %v260_v60  ;;  %v910_v8 = vsub.f32 %v215_v24, %v260_v60 }
  0x40   : > { %v269_v3 = vmul.f32 %v888_v61, %v888_v61  ;;  %v270_v4 = vmul.f32 %v890_v62, %v890_v62  ;;  %v271_v5 = vmul.f32 %v892_v63, %v892_v63  ;;  %v272_v6 = vmul.f32 %v894_v0, %v894_v0 }
  0x41   : > { %v273_v9 = vmul.f32 %v896_v1, %v896_v1  ;;  %v274_v10 = vmul.f32 %v898_v2, %v898_v2  ;;  %v275_v15 = vmul.f32 %v908_v7, %v908_v7  ;;  %v276_v16 = vmul.f32 %v910_v8, %v910_v8 }
  0x42   : > { %v277_v11 = vsel %vm216_vm0, %v269_v3, 0.0  ;;  %v278_v12 = vsel %vm216_vm0, %v270_v4, 0.0  ;;  %v286_v13 = vsel %vm216_vm0, %v271_v5, 0.0  ;;  %v287_v14 = vsel %vm216_vm0, %v272_v6, 0.0 }
  0x43   : > { %v279_v17 = vadd.f32 %v278_v12, %v277_v11  ;;  %v288_v18 = vadd.f32 %v287_v14, %v286_v13  ;;  %v295_v19 = vsel %vm216_vm0, %v273_v9, 0.0  ;;  %v296_v20 = vsel %vm216_vm0, %v274_v10, 0.0 }
  0x44   : > { %v297_v23 = vadd.f32 %v296_v20, %v295_v19  ;;  %v304_v24 = vsel %vm216_vm0, %v275_v15, 0.0  ;;  %v305_v25 = vsel %vm216_vm0, %v276_v16, 0.0 }
  0x45   : > { %v280_v21 = vrot.slane %v279_v17, 4  ;;  %v289_v22 = vrot.slane %v288_v18, 4  ;;  %v306_v29 = vadd.f32 %v305_v25, %v304_v24 }
  0x46   : > { %v298_v28 = vrot.slane %v297_v23, 4 }
  0x47   : > { %v281_v26 = vadd.f32 %v280_v21, %v279_v17  ;;  %v290_v27 = vadd.f32 %v289_v22, %v288_v18  ;;  %v307_v33 = vrot.slane %v306_v29, 4 }
  0x48   : > { %v299_v32 = vadd.f32 %v298_v28, %v297_v23 }
  0x49   : > { %v282_v30 = vrot.slane %v281_v26, 2  ;;  %v291_v31 = vrot.slane %v290_v27, 2  ;;  %v308_v37 = vadd.f32 %v307_v33, %v306_v29 }
  0x4a   : > { %v300_v36 = vrot.slane %v299_v32, 2 }
  0x4b   : > { %v283_v34 = vadd.f32 %v282_v30, %v281_v26  ;;  %v292_v35 = vadd.f32 %v291_v31, %v290_v27  ;;  %v309_v41 = vrot.slane %v308_v37, 2 }
  0x4c   : > { %v301_v40 = vadd.f32 %v300_v36, %v299_v32 }
  0x4d   : > { %v284_v38 = vrot.slane %v283_v34, 1  ;;  %v293_v39 = vrot.slane %v292_v35, 1  ;;  %v310_v45 = vadd.f32 %v309_v41, %v308_v37 }
  0x4e   : > { %v302_v44 = vrot.slane %v301_v40, 1 }
  0x4f   : > { %v285_v42 = vadd.f32 %v284_v38, %v283_v34  ;;  %v294_v43 = vadd.f32 %v293_v39, %v292_v35  ;;  %v311_v47 = vrot.slane %v310_v45, 1 }
  0x50   : > { %v303_v46 = vadd.f32 %v302_v44, %v301_v40 }
  0x51   : > { %v313_v48 = vsel %vm216_vm0, %v285_v42, 0.0  ;;  %v314_v49 = vsel %vm216_vm0, %v294_v43, 0.0  ;;  %v312_v51 = vadd.f32 %v311_v47, %v310_v45 }
  0x52   : > { %v315_v50 = vadd.f32 %v314_v49, %v313_v48  ;;  %v316_v52 = vsel %vm216_vm0, %v303_v46, 0.0 }
  0x53   : > { %v318_v54 = vsel %vm216_vm0, %v312_v51, 0.0 }
  0x54   : > { %v317_v53 = vadd.f32 %v316_v52, %v315_v50 }
  0x56   : > { %v319_v55 = vadd.f32 %v318_v54, %v317_v53 }
  0x58   : > { %v320_v56 = vmul.f32 0.015873017, %v319_v55 }
  0x5a   : > { %v321_v57 = vadd.f32 1e-05, %v320_v56 }
  0x5c   : > { %617 = vrsqrt.f32 %v321_v57  ;;  %vm328_vm1 = vweird.f32 %v321_v57 }
  0x62   : > { %v618_v58 = vpop.eup %617 }
  0x63   : > { %v323_v59 = vmul.f32 %v618_v58, %v321_v57  ;;  %vm329_vm2 = vweird.f32 %v618_v58 }
  0x64   : > { %vm330_vm3 = vmor %vm328_vm1, %vm329_vm2 }
  0x65   : > { %v324_v60 = vmul.f32 %v618_v58, %v323_v59 }
  0x67   : > { %v325_v3 = vmul.f32 0.5, %v324_v60 }
  0x69   : > { %v326_v4 = vsub.f32 1.5, %v325_v3 }
  0x6b   : > { %v327_v5 = vmul.f32 %v618_v58, %v326_v4 }
  0x6d   : > { %v331_v6 = vsel %vm330_vm3, %v618_v58, %v327_v5 }
  0x6e   : > { %v332_v9 = vmul.f32 %v331_v6, %v888_v61  ;;  %v333_v10 = vmul.f32 %v331_v6, %v890_v62  ;;  %v334_v18 = vmul.f32 %v331_v6, %v892_v63  ;;  %v335_v61 = vmul.f32 %v331_v6, %v894_v0 }
  0x6f   : > { %v338_v23 = vmul.f32 %v331_v6, %v908_v7  ;;  %v339_v24 = vmul.f32 %v331_v6, %v910_v8  ;;  %v336_v25 = vmul.f32 %v331_v6, %v896_v1  ;;  %v337_v63 = vmul.f32 %v331_v6, %v898_v2 }
  0x7f   : > { %v390_v12 = vpop.permute.xlu2 %389 }
  0x87   : > { %v394_v22 = vpop.permute.xlu2 %393 }
  0x96   : > { %v362_v11 = vpop.permute.xlu1 %361 }
  0x97   : > { %v354_v13 = vpop.permute.xlu0 %353  ;;  %v372_v7 = vmul.f32 %v362_v11, %v336_v25  ;;  %v373_v1 = vmul.f32 %v362_v11, %v337_v63 }
  0x98   : > { %v368_v14 = vmul.f32 %v354_v13, %v332_v9  ;;  %v369_v15 = vmul.f32 %v354_v13, %v333_v10 }
  0x9a   : > { %v404_v16 = vadd.f32 %v390_v12, %v368_v14  ;;  %v405_v17 = vadd.f32 %v390_v12, %v369_v15 }
  0x9c   : > { %412 = vst.msk [vmem:[%s936_s22] sm:$0xff] %vm216_vm0, %v404_v16 }
  0x9d   : > { %413 = vst.msk [vmem:[%s936_s22 + $0x8] sm:$0xff] %vm216_vm0, %v405_v17 }
  0x9e   : > { %v366_v62 = vpop.permute.xlu1 %365 }
  0x9f   : > { %v358_v19 = vpop.permute.xlu0 %357  ;;  %v374_v27 = vmul.f32 %v366_v62, %v338_v23  ;;  %v375_v28 = vmul.f32 %v366_v62, %v339_v24 }
  0xa0   : > { %v370_v20 = vmul.f32 %v358_v19, %v334_v18  ;;  %v371_v21 = vmul.f32 %v358_v19, %v335_v61 }
  0xa2   : > { %v406_v26 = vadd.f32 %v394_v22, %v370_v20  ;;  %v407_v0 = vadd.f32 %v394_v22, %v371_v21 }
  0xa4   : > { %414 = vst.msk [vmem:[%s936_s22 + $0x10] sm:$0xff] %vm216_vm0, %v406_v26 }
  0xa5   : > { %415 = vst.msk [vmem:[%s936_s22 + $0x18] sm:$0xff] %vm216_vm0, %v407_v0 }
  0xa6   : > { %v402_v2 = vpop.permute.xlu1 %401 }
  0xa7   : > { %v410_v8 = vadd.f32 %v402_v2, %v374_v27  ;;  %v411_v29 = vadd.f32 %v402_v2, %v375_v28  ;;  %v398_v30 = vpop.permute.xlu0 %397 }
  0xa8   : > { %v408_v31 = vadd.f32 %v398_v30, %v372_v7  ;;  %v409_v32 = vadd.f32 %v398_v30, %v373_v1 }
  0xa9   : > { %418 = vst.msk [vmem:[%s936_s22 + $0x30] sm:$0xff] %vm216_vm0, %v410_v8 }
  0xaa   : > { %419 = vst.msk [vmem:[%s936_s22 + $0x38] sm:$0xff] %vm216_vm0, %v411_v29 }
  0xab   : > { %416 = vst.msk [vmem:[%s936_s22 + $0x20] sm:$0xff] %vm216_vm0, %v408_v31 }
  0xac   : > { %417 = vst.msk [vmem:[%s936_s22 + $0x28] sm:$0xff] %vm216_vm0, %v409_v32 }
  0xad   : > { %676 = shalt.err (!%p673_p13)
}
  0xae   : > { %s736_s19 = smov 128   ;;  %s737_s28 = smov 8  }
  0xaf   : > { %541 = dma.vmem_to_hbm [thread:$0]  (%p809_p9), %s435_s15, 1024, %s437_s5, %s421_s6, %s736_s19, %s736_s19, %s737_s28  }
  0xb0 PF: > { %s451_s29 = sand.u32 1, %s711_s12   ;;  %p548_p0 = pnand %p525_p12, %p816_p11 }
  0xb1   : > { %s452_s22 = scalar_lea.sflag [#allocation4], %s451_s29 }
  0xb2   : > { %p549_p1 = pneg %p548_p0 }
  0xb4   : > { %706 = dma.done.wait (%p549_p1), %s452_s22, 1024  }
  0xb5   : > { %708 = vsyncadd (%p549_p1), %s452_s22, 4294966272  ;;  %s19_s17 = sadd.s32 1, %s731_s17   ;;  %s1007_s12 = smov %s715_s13 }
  0xb6   : > { %p16_p2 = scmp.ge.s32.totalorder %s19_s17, 4   ;;  %s1008_s13 = smov %s719_s14 }
  0xb7   : > { %s1009_s14 = smov %s814_s26  ;;  %s1010_s15 = smov %s727_s16 }
  0xb8   : > { %s1011_s16 = smov %s1013_s20  ;;  %18 = sbr.rel (!%p16_p2) target bundleno = 6 (0x6), region = 77 }
  0xbd   :  { %458 = vsyncpa [#allocation3], 1 }
  0xbe   :  { %460 = vsyncpa [#allocation3 + $0x1], 1 }
  0xbf   :  { %461 = vsyncpa [#allocation4], 1 }
  0xc0   :  { %463 = vsyncpa [#allocation4 + $0x1], 1 }

</bundles_post_ra>
